<compile_context>
chip_gen: v7x
topology: tpu7x:2x2x1
jax: 0.10.0
libtpu: 0.0.40
codegen_flags: <defaults>
</compile_context>

<pallas_src>
import math
import jax
import jax.numpy as jnp
from jax.experimental import pallas as pl
from jax.experimental.pallas import tpu as pltpu

_LANE = 128
_SUBLANE = 8
# Conservative per-call VMEM budget (bytes) used to cap the batch tile; stays
# far below the smallest scoped-VMEM default (v7x: 32 MiB) even with
# double-buffered activation tiles + resident weights.
_VMEM_BUDGET = 12 * 1024 * 1024


def _round_up(x, m):
    return ((x + m - 1) // m) * m


def _pad_axis(x, target, axis):
    pad = target - x.shape[axis]
    if pad <= 0:
        return x
    widths = [(0, 0)] * x.ndim
    widths[axis] = (0, pad)
    return jnp.pad(x, widths)


def disc_kernel(y_ref,
                w1_ref, b1_ref,
                w2_ref, b2_ref,
                w3_ref, b3_ref,
                w4_ref, b4_ref,
                out_ref):
    # Fused forward pass for one batch tile, entirely in VMEM.
    # Weights may be bf16 (v6e/v7x); accumulate in f32, elementwise ops in f32.
    wdt = w1_ref.dtype
    h = jnp.dot(y_ref[...], w1_ref[...], preferred_element_type=jnp.float32) + b1_ref[...]
    h = jnp.maximum(h, 0.0)
    h = jnp.dot(h.astype(wdt), w2_ref[...], preferred_element_type=jnp.float32) + b2_ref[...]
    h = jnp.maximum(h, 0.0)
    h = jnp.dot(h.astype(wdt), w3_ref[...], preferred_element_type=jnp.float32) + b3_ref[...]
    h = jnp.maximum(h, 0.0)
    h = jnp.dot(h.astype(wdt), w4_ref[...], preferred_element_type=jnp.float32) + b4_ref[...]
    out_ref[...] = jax.nn.sigmoid(h).astype(out_ref.dtype)


def discriminator_forward(y, params, *, tile_b=None, compute_dtype=jnp.float32):
    """y: [B, D_in] float32. params: dict of (w, b) per layer, w: [in, out], b: [1, out].

    compute_dtype: dtype of y / weights fed to the MXU (jnp.bfloat16 recommended
    on v6e/v7x for large, HBM-bound batches; f32 by default for exact parity).
    """
    B, D_in = y.shape
    (w1, b1), (w2, b2), (w3, b3), (w4, b4) = (
        params["fc1"], params["fc2"], params["fc3"], params["out"])
    D_out = w4.shape[1]

    # --- lane-pad every feature dim to a multiple of 128 (zero padding is inert) ---
    def pad_w(w):
        wp = _pad_axis(w, _round_up(w.shape[0], _LANE), 0)
        wp = _pad_axis(wp, _round_up(wp.shape[1], _LANE), 1)
        return wp.astype(compute_dtype)

    def pad_b(b):
        return _pad_axis(b, _round_up(b.shape[1], _LANE), 1).astype(jnp.float32)

    w1p, w2p, w3p, w4p = pad_w(w1), pad_w(w2), pad_w(w3), pad_w(w4)
    b1p, b2p, b3p, b4p = pad_b(b1), pad_b(b2), pad_b(b3), pad_b(b4)
    D_in_p = w1p.shape[0]
    D_out_p = w4p.shape[1]

    # --- batch tiling: single step for small B; otherwise the largest tile the
    #     VMEM budget allows (capped at 512 rows), rounded to sublane multiples ---
    if tile_b is None:
        # Resident bytes: weights + biases (single-buffered, constant index_map).
        cd_bytes = jnp.dtype(compute_dtype).itemsize
        weight_bytes = sum(int(w.size) * cd_bytes for w in (w1p, w2p, w3p, w4p))
        bias_bytes = sum(int(b.size) * 4 for b in (b1p, b2p, b3p, b4p))
        # Per-row streamed bytes: in + out tiles, double-buffered.
        per_row = 2 * (D_in_p * cd_bytes + D_out_p * 4)
        avail = max(_VMEM_BUDGET - weight_bytes - bias_bytes, per_row * _SUBLANE)
        tile_b = min(_round_up(B, _SUBLANE), 512, avail // per_row)
    tile_b = max(_SUBLANE, (tile_b // _SUBLANE) * _SUBLANE)
    B_pad = _round_up(B, tile_b)

    yp = _pad_axis(_pad_axis(y, B_pad, 0), D_in_p, 1).astype(compute_dtype)

    grid = (B_pad // tile_b,)

    def const_spec(shape):
        # Weights/biases: constant index_map -> stay resident in VMEM across steps.
        return pl.BlockSpec(shape, lambda i: (0, 0))

    out_padded = pl.pallas_call(
        disc_kernel,
        out_shape=jax.ShapeDtypeStruct((B_pad, D_out_p), jnp.float32),
        grid_spec=pltpu.PrefetchScalarGridSpec(
            num_scalar_prefetch=0,
            grid=grid,
            in_specs=[
                pl.BlockSpec((tile_b, D_in_p), lambda i: (i, 0)),
                const_spec(w1p.shape), const_spec(b1p.shape),
                const_spec(w2p.shape), const_spec(b2p.shape),
                const_spec(w3p.shape), const_spec(b3p.shape),
                const_spec(w4p.shape), const_spec(b4p.shape),
            ],
            out_specs=pl.BlockSpec((tile_b, D_out_p), lambda i: (i, 0)),
        ),
        compiler_params=pltpu.CompilerParams(
            dimension_semantics=("parallel",)),
    )(yp, w1p, b1p, w2p, b2p, w3p, b3p, w4p, b4p)

    # Slice away padded batch rows and padded output columns (sigmoid(0)=0.5 junk).
    return out_padded[:B, :D_out]


def xavier_uniform(key, fan_in, fan_out):
    # Matches torch.nn.init.xavier_uniform_ (gain=1), stored as [in, out].
    limit = math.sqrt(6.0 / (fan_in + fan_out))
    return jax.random.uniform(key, (fan_in, fan_out), jnp.float32, -limit, limit)


def linear_bias(key, fan_in, fan_out):
    # Matches torch.nn.Linear default bias init: U(-1/sqrt(fan_in), 1/sqrt(fan_in)).
    limit = 1.0 / math.sqrt(fan_in)
    return jax.random.uniform(key, (1, fan_out), jnp.float32, -limit, limit)


def init_params(key, D_in, D_out, w1, w2, w3):
    keys = jax.random.split(key, 8)
    dims = [(D_in, w1), (w1, w2), (w2, w3), (w3, D_out)]
    names = ["fc1", "fc2", "fc3", "out"]
    params = {}
    for n, (fi, fo), kw, kb in zip(names, dims, keys[0::2], keys[1::2]):
        params[n] = (xavier_uniform(kw, fi, fo), linear_bias(kb, fi, fo))
    return params


def reference_forward(y, params):
    (w1, b1), (w2, b2), (w3, b3), (w4, b4) = (
        params["fc1"], params["fc2"], params["fc3"], params["out"])
    h = jax.nn.relu(y @ w1 + b1)
    h = jax.nn.relu(h @ w2 + b2)
    h = jax.nn.relu(h @ w3 + b3)
    return jax.nn.sigmoid(h @ w4 + b4)


if __name__ == "__main__":
    # Small shapes consistent with the module's MLP forward.
    B, D_in, W1, W2, W3, D_out = 16, 32, 64, 64, 32, 16

    key = jax.random.PRNGKey(0)
    k_params, k_x = jax.random.split(key)
    params = init_params(k_params, D_in, D_out, W1, W2, W3)
    y = jax.random.normal(k_x, (B, D_in), jnp.float32)

    # tile_b=None -> whole (lane/sublane-padded) batch in one grid step here.
    out = discriminator_forward(y, params)
    out = jax.block_until_ready(out)

    ref = reference_forward(y, params)
    assert out.shape == (B, D_out)
    assert jnp.allclose(out, ref, atol=1e-5, rtol=1e-5), "mismatch vs JAX reference"

    print("KERNEL_OK")
</pallas_src>

<mosaic_0001>
module attributes {stable_mosaic.version = 11 : i64} {
  func.func @disc_kernel(%arg0: i32, %arg1: memref<16x128xf32, #tpu.memory_space<vmem>>, %arg2: memref<128x128xf32, #tpu.memory_space<vmem>>, %arg3: memref<1x128xf32, #tpu.memory_space<vmem>>, %arg4: memref<128x128xf32, #tpu.memory_space<vmem>>, %arg5: memref<1x128xf32, #tpu.memory_space<vmem>>, %arg6: memref<128x128xf32, #tpu.memory_space<vmem>>, %arg7: memref<1x128xf32, #tpu.memory_space<vmem>>, %arg8: memref<128x128xf32, #tpu.memory_space<vmem>>, %arg9: memref<1x128xf32, #tpu.memory_space<vmem>>, %arg10: memref<16x128xf32, #tpu.memory_space<vmem>>) attributes {dimension_semantics = [#tpu.dimension_semantics<parallel>], iteration_bounds = array<i64: 1>, scalar_prefetch = 0 : i64, scratch_operands = 0 : i64, tpu.core_type = #tpu.core_type<tc>, window_params = [{transform_indices = @transform_0, window_bounds = array<i64: 16, 128>}, {pipeline_mode = #tpu.pipeline_mode<synchronous>, transform_indices = @transform_1, window_bounds = array<i64: 128, 128>}, {pipeline_mode = #tpu.pipeline_mode<synchronous>, transform_indices = @transform_2, window_bounds = array<i64: 1, 128>}, {pipeline_mode = #tpu.pipeline_mode<synchronous>, transform_indices = @transform_3, window_bounds = array<i64: 128, 128>}, {pipeline_mode = #tpu.pipeline_mode<synchronous>, transform_indices = @transform_4, window_bounds = array<i64: 1, 128>}, {pipeline_mode = #tpu.pipeline_mode<synchronous>, transform_indices = @transform_5, window_bounds = array<i64: 128, 128>}, {pipeline_mode = #tpu.pipeline_mode<synchronous>, transform_indices = @transform_6, window_bounds = array<i64: 1, 128>}, {pipeline_mode = #tpu.pipeline_mode<synchronous>, transform_indices = @transform_7, window_bounds = array<i64: 128, 128>}, {pipeline_mode = #tpu.pipeline_mode<synchronous>, transform_indices = @transform_8, window_bounds = array<i64: 1, 128>}, {transform_indices = @transform_9, window_bounds = array<i64: 16, 128>}]} {
    %c0 = arith.constant 0 : index
    %c0_0 = arith.constant 0 : index
    %0 = vector.load %arg1[%c0, %c0_0] : memref<16x128xf32, #tpu.memory_space<vmem>>, vector<16x128xf32>
    %c0_1 = arith.constant 0 : index
    %c0_2 = arith.constant 0 : index
    %1 = vector.load %arg2[%c0_1, %c0_2] : memref<128x128xf32, #tpu.memory_space<vmem>>, vector<128x128xf32>
    %cst = arith.constant dense<0.000000e+00> : vector<16x128xf32>
    %2 = tpu.matmul %0, %1, %cst {dimension_numbers = #tpu.dot_dimension_numbers<[1], [0], [0], [1], [0, 0, 1, 1], [], []>} : vector<16x128xf32>, vector<128x128xf32>, vector<16x128xf32> -> vector<16x128xf32>
    %c0_3 = arith.constant 0 : index
    %c0_4 = arith.constant 0 : index
    %3 = vector.load %arg3[%c0_3, %c0_4] : memref<1x128xf32, #tpu.memory_space<vmem>>, vector<1x128xf32>
    %4 = vector.broadcast %3 : vector<1x128xf32> to vector<16x128xf32>
    %5 = arith.addf %2, %4 : vector<16x128xf32>
    %cst_5 = arith.constant 0.000000e+00 : f32
    %6 = vector.broadcast %cst_5 : f32 to vector<16x128xf32>
    %7 = arith.maximumf %5, %6 : vector<16x128xf32>
    %c0_6 = arith.constant 0 : index
    %c0_7 = arith.constant 0 : index
    %8 = vector.load %arg4[%c0_6, %c0_7] : memref<128x128xf32, #tpu.memory_space<vmem>>, vector<128x128xf32>
    %cst_8 = arith.constant dense<0.000000e+00> : vector<16x128xf32>
    %9 = tpu.matmul %7, %8, %cst_8 {dimension_numbers = #tpu.dot_dimension_numbers<[1], [0], [0], [1], [0, 0, 1, 1], [], []>} : vector<16x128xf32>, vector<128x128xf32>, vector<16x128xf32> -> vector<16x128xf32>
    %c0_9 = arith.constant 0 : index
    %c0_10 = arith.constant 0 : index
    %10 = vector.load %arg5[%c0_9, %c0_10] : memref<1x128xf32, #tpu.memory_space<vmem>>, vector<1x128xf32>
    %11 = vector.broadcast %10 : vector<1x128xf32> to vector<16x128xf32>
    %12 = arith.addf %9, %11 : vector<16x128xf32>
    %cst_11 = arith.constant 0.000000e+00 : f32
    %13 = vector.broadcast %cst_11 : f32 to vector<16x128xf32>
    %14 = arith.maximumf %12, %13 : vector<16x128xf32>
    %c0_12 = arith.constant 0 : index
    %c0_13 = arith.constant 0 : index
    %15 = vector.load %arg6[%c0_12, %c0_13] : memref<128x128xf32, #tpu.memory_space<vmem>>, vector<128x128xf32>
    %cst_14 = arith.constant dense<0.000000e+00> : vector<16x128xf32>
    %16 = tpu.matmul %14, %15, %cst_14 {dimension_numbers = #tpu.dot_dimension_numbers<[1], [0], [0], [1], [0, 0, 1, 1], [], []>} : vector<16x128xf32>, vector<128x128xf32>, vector<16x128xf32> -> vector<16x128xf32>
    %c0_15 = arith.constant 0 : index
    %c0_16 = arith.constant 0 : index
    %17 = vector.load %arg7[%c0_15, %c0_16] : memref<1x128xf32, #tpu.memory_space<vmem>>, vector<1x128xf32>
    %18 = vector.broadcast %17 : vector<1x128xf32> to vector<16x128xf32>
    %19 = arith.addf %16, %18 : vector<16x128xf32>
    %cst_17 = arith.constant 0.000000e+00 : f32
    %20 = vector.broadcast %cst_17 : f32 to vector<16x128xf32>
    %21 = arith.maximumf %19, %20 : vector<16x128xf32>
    %c0_18 = arith.constant 0 : index
    %c0_19 = arith.constant 0 : index
    %22 = vector.load %arg8[%c0_18, %c0_19] : memref<128x128xf32, #tpu.memory_space<vmem>>, vector<128x128xf32>
    %cst_20 = arith.constant dense<0.000000e+00> : vector<16x128xf32>
    %23 = tpu.matmul %21, %22, %cst_20 {dimension_numbers = #tpu.dot_dimension_numbers<[1], [0], [0], [1], [0, 0, 1, 1], [], []>} : vector<16x128xf32>, vector<128x128xf32>, vector<16x128xf32> -> vector<16x128xf32>
    %c0_21 = arith.constant 0 : index
    %c0_22 = arith.constant 0 : index
    %24 = vector.load %arg9[%c0_21, %c0_22] : memref<1x128xf32, #tpu.memory_space<vmem>>, vector<1x128xf32>
    %25 = vector.broadcast %24 : vector<1x128xf32> to vector<16x128xf32>
    %26 = arith.addf %23, %25 : vector<16x128xf32>
    %27 = arith.negf %26 : vector<16x128xf32>
    %28 = math.exp %27 : vector<16x128xf32>
    %cst_23 = arith.constant 1.000000e+00 : f32
    %29 = vector.broadcast %cst_23 : f32 to vector<16x128xf32>
    %30 = arith.addf %29, %28 : vector<16x128xf32>
    %31 = arith.divf %29, %30 : vector<16x128xf32>
    %c0_24 = arith.constant 0 : index
    %c0_25 = arith.constant 0 : index
    %32 = vector.load %arg10[%c0_24, %c0_25] : memref<16x128xf32, #tpu.memory_space<vmem>>, vector<16x128xf32>
    tpu.vector_store %arg10[%c0_24, %c0_25], %31 {strides = array<i32>} : memref<16x128xf32, #tpu.memory_space<vmem>>, vector<16x128xf32>,
    return
  }
  func.func @transform_0(%arg0: i32) -> (i32, i32) {
    %c0_i32 = arith.constant 0 : i32
    %c0_i32_0 = arith.constant 0 : i32
    return %arg0, %c0_i32 : i32, i32
  }
  func.func @transform_1(%arg0: i32) -> (i32, i32) {
    %c0_i32 = arith.constant 0 : i32
    %c0_i32_0 = arith.constant 0 : i32
    %c0_i32_1 = arith.constant 0 : i32
    return %c0_i32, %c0_i32_0 : i32, i32
  }
  func.func @transform_2(%arg0: i32) -> (i32, i32) {
    %c0_i32 = arith.constant 0 : i32
    %c0_i32_0 = arith.constant 0 : i32
    %c0_i32_1 = arith.constant 0 : i32
    return %c0_i32, %c0_i32_0 : i32, i32
  }
  func.func @transform_3(%arg0: i32) -> (i32, i32) {
    %c0_i32 = arith.constant 0 : i32
    %c0_i32_0 = arith.constant 0 : i32
    %c0_i32_1 = arith.constant 0 : i32
    return %c0_i32, %c0_i32_0 : i32, i32
  }
  func.func @transform_4(%arg0: i32) -> (i32, i32) {
    %c0_i32 = arith.constant 0 : i32
    %c0_i32_0 = arith.constant 0 : i32
    %c0_i32_1 = arith.constant 0 : i32
    return %c0_i32, %c0_i32_0 : i32, i32
  }
  func.func @transform_5(%arg0: i32) -> (i32, i32) {
    %c0_i32 = arith.constant 0 : i32
    %c0_i32_0 = arith.constant 0 : i32
    %c0_i32_1 = arith.constant 0 : i32
    return %c0_i32, %c0_i32_0 : i32, i32
  }
  func.func @transform_6(%arg0: i32) -> (i32, i32) {
    %c0_i32 = arith.constant 0 : i32
    %c0_i32_0 = arith.constant 0 : i32
    %c0_i32_1 = arith.constant 0 : i32
    return %c0_i32, %c0_i32_0 : i32, i32
  }
  func.func @transform_7(%arg0: i32) -> (i32, i32) {
    %c0_i32 = arith.constant 0 : i32
    %c0_i32_0 = arith.constant 0 : i32
    %c0_i32_1 = arith.constant 0 : i32
    return %c0_i32, %c0_i32_0 : i32, i32
  }
  func.func @transform_8(%arg0: i32) -> (i32, i32) {
    %c0_i32 = arith.constant 0 : i32
    %c0_i32_0 = arith.constant 0 : i32
    %c0_i32_1 = arith.constant 0 : i32
    return %c0_i32, %c0_i32_0 : i32, i32
  }
  func.func @transform_9(%arg0: i32) -> (i32, i32) {
    %c0_i32 = arith.constant 0 : i32
    %c0_i32_0 = arith.constant 0 : i32
    return %arg0, %c0_i32 : i32, i32
  }
}

</mosaic_0001>

<bundles_post_ra>
// kernel: tpu_custom_call.1
= control target key start
LH: loop header
LB: loop body
LE: loop exit
PB: predicated region body
PF: predicated region fallthrough
CT: control target
= control target key end

     0   :  { %14 = vsyncpa [#allocation3], 0  ;;  %s1210_s0 = inlined_call_operand.hbm [shape: f32[16,128], index: 0, kind: input, shape index: {}]   ;;  %s1211_s1 = inlined_call_operand.hbm [shape: f32[128,128], index: 1, kind: input, shape index: {}]   ;;  %s1212_s2 = inlined_call_operand.vmem [shape: f32[1,128], index: 2, kind: input, shape index: {}]   ;;  %s1213_s3 = inlined_call_operand.hbm [shape: f32[128,128], index: 3, kind: input, shape index: {}]   ;;  %s1214_s4 = inlined_call_operand.vmem [shape: f32[1,128], index: 4, kind: input, shape index: {}]   ;;  %s1215_s5 = inlined_call_operand.hbm [shape: f32[128,128], index: 5, kind: input, shape index: {}]   ;;  %s1216_s6 = inlined_call_operand.vmem [shape: f32[1,128], index: 6, kind: input, shape index: {}]   ;;  %s1217_s7 = inlined_call_operand.hbm [shape: f32[128,128], index: 7, kind: input, shape index: {}]   ;;  %s1218_s8 = inlined_call_operand.vmem [shape: f32[1,128], index: 8, kind: input, shape index: {}]   ;;  %s1219_s9 = inlined_call_operand.hbm [shape: f32[16,128], index: 9, kind: output, shape index: {}]  }
   0x1   :  { %15 = vsyncpa [#allocation6], 0 }
   0x2   :  { %16 = vsyncpa [#allocation9], 0 }
   0x3   :  { %17 = vsyncpa [#allocation4], 0  ;;  %s1036_s30 = smov [#allocation5]   ;;  %s1037_s11 = smov [#allocation8]  }
   0x4   :  { %s35_s10 = sshll.u32 %s1036_s30, 4  ;;  %s63_s12 = sshll.u32 %s1037_s11, 4  ;;  %s36_s10 = int_to_ptr.vmem [resolvable:$true] %s35_s10  ;;  %s1094_s12 = int_to_ptr.vmem [resolvable:$true] %s63_s12 }
   0x5   :  { %s896_s15 = scalar_lea.hbm %s1211_s1, 2048 }
   0x6   :  { %p897_p0 = scmp.ne.s32.totalorder %s1211_s1, %s896_s15  ;;  %p900_p1 = scmp.lt.u32.totalorder %s896_s15, %s1211_s1 }
   0x8   :  { %p902_p2 = pnand %p900_p1, %p897_p0 }
   0xa   :  { %905 = shalt.err (!%p902_p2)
}
   0xb   :  { %s906_s20 = scalar_lea.vmem %s36_s10, 2048  ;;  %p911_p4 = scmp.lt.s32.totalorder %s36_s10, %s36_s10 }
   0xc   :  { %p907_p3 = scmp.ne.s32.totalorder %s36_s10, %s906_s20  ;;  %p912_p5 = scmp.lt.s32.totalorder %s906_s20, %s906_s20 }
   0xe   :  { %p913_p6 = por %p912_p5, %p911_p4 }
  0x10   :  { %p914_p7 = pnand %p913_p6, %p907_p3 }
  0x12   :  { %917 = shalt.err (!%p914_p7)
}
  0x13   :  { %s1038_s21 = smov 128   ;;  %s1039_s22 = smov 8  }
  0x14   :  { %41 = dma.hbm_to_vmem [thread:$0]  %s1211_s1, 2048, %s36_s10, [#allocation6], %s1038_s21, %s1038_s21, %s1039_s22  }
  0x15   :  { %s918_s27 = scalar_lea.hbm %s1215_s5, 2048 }
  0x16   :  { %p919_p8 = scmp.ne.s32.totalorder %s1215_s5, %s918_s27  ;;  %p922_p9 = scmp.lt.u32.totalorder %s918_s27, %s1215_s5 }
  0x18   :  { %p924_p10 = pnand %p922_p9, %p919_p8 }
  0x1a   :  { %927 = shalt.err (!%p924_p10)
}
  0x1b   :  { %s928_s13 = scalar_lea.vmem %s1094_s12, 2048  ;;  %p933_p12 = scmp.lt.s32.totalorder %s1094_s12, %s1094_s12 }
  0x1c   :  { %p929_p11 = scmp.ne.s32.totalorder %s1094_s12, %s928_s13  ;;  %p934_p13 = scmp.lt.s32.totalorder %s928_s13, %s928_s13 }
  0x1e   :  { %p935_p0 = por %p934_p13, %p933_p12 }
  0x20   :  { %p936_p1 = pnand %p935_p0, %p929_p11 }
  0x22   :  { %939 = shalt.err (!%p936_p1)
}
  0x23   :  { %69 = dma.hbm_to_vmem [thread:$0]  %s1215_s5, 2048, %s1094_s12, [#allocation9], %s1038_s21, %s1038_s21, %s1039_s22  }
  0x24   :  { %s1040_s14 = smov [#allocation2]   ;;  %s1041_s16 = smov [#allocation7]  }
  0x25   :  { %s23_s15 = sshll.u32 %s1040_s14, 4  ;;  %s49_s17 = sshll.u32 %s1041_s16, 4  ;;  %s24_s15 = int_to_ptr.vmem [resolvable:$true] %s23_s15  ;;  %s1131_s17 = int_to_ptr.vmem [resolvable:$true] %s49_s17 }
  0x26   :  { %s940_s20 = scalar_lea.hbm %s1210_s0, 256 }
  0x27   :  { %p941_p2 = scmp.ne.s32.totalorder %s1210_s0, %s940_s20  ;;  %p944_p3 = scmp.lt.u32.totalorder %s940_s20, %s1210_s0 }
  0x29   :  { %p946_p4 = pnand %p944_p3, %p941_p2 }
  0x2b   :  { %949 = shalt.err (!%p946_p4)
}
  0x2c   :  { %s950_s5 = scalar_lea.vmem %s24_s15, 256  ;;  %p955_p6 = scmp.lt.s32.totalorder %s24_s15, %s24_s15 }
  0x2d   :  { %p951_p5 = scmp.ne.s32.totalorder %s24_s15, %s950_s5  ;;  %p956_p7 = scmp.lt.s32.totalorder %s950_s5, %s950_s5 }
  0x2f   :  { %p957_p8 = por %p956_p7, %p955_p6 }
  0x31   :  { %p958_p9 = pnand %p957_p8, %p951_p5 }
  0x33   :  { %961 = shalt.err (!%p958_p9)
}
  0x34   :  { %29 = dma.hbm_to_vmem [thread:$0]  %s1210_s0, 256, %s24_s15, [#allocation3], %s1038_s21, %s1038_s21, %s1039_s22  }
  0x35   :  { %s962_s30 = scalar_lea.hbm %s1213_s3, 2048 }
  0x36   :  { %p963_p10 = scmp.ne.s32.totalorder %s1213_s3, %s962_s30  ;;  %p966_p11 = scmp.lt.u32.totalorder %s962_s30, %s1213_s3 }
  0x38   :  { %p968_p12 = pnand %p966_p11, %p963_p10 }
  0x3a   :  { %971 = shalt.err (!%p968_p12)
}
  0x3b   :  { %s972_s14 = scalar_lea.vmem %s1131_s17, 2048  ;;  %p977_p0 = scmp.lt.s32.totalorder %s1131_s17, %s1131_s17 }
  0x3c   :  { %p973_p13 = scmp.ne.s32.totalorder %s1131_s17, %s972_s14  ;;  %p978_p1 = scmp.lt.s32.totalorder %s972_s14, %s972_s14 }
  0x3e   :  { %p979_p2 = por %p978_p1, %p977_p0 }
  0x40   :  { %p980_p3 = pnand %p979_p2, %p973_p13 }
  0x42   :  { %983 = shalt.err (!%p980_p3)
}
  0x43   :  { %55 = dma.hbm_to_vmem [thread:$0]  %s1213_s3, 2048, %s1131_s17, [#allocation6], %s1038_s21, %s1038_s21, %s1039_s22  }
  0x44   :  { %s1042_s16 = smov [#allocation10]   ;;  %s984_s23 = scalar_lea.hbm %s1217_s7, 2048 }
  0x45   :  { %s77_s18 = sshll.u32 %s1042_s16, 4  ;;  %p985_p4 = scmp.ne.s32.totalorder %s1217_s7, %s984_s23  ;;  %s78_s18 = int_to_ptr.vmem [resolvable:$true] %s77_s18 }
  0x46   :  { %p988_p5 = scmp.lt.u32.totalorder %s984_s23, %s1217_s7 }
  0x48   :  { %p990_p6 = pnand %p988_p5, %p985_p4 }
  0x4a   :  { %993 = shalt.err (!%p990_p6)
}
  0x4b   :  { %s994_s12 = scalar_lea.vmem %s78_s18, 2048  ;;  %p999_p8 = scmp.lt.s32.totalorder %s78_s18, %s78_s18 }
  0x4c   :  { %p995_p7 = scmp.ne.s32.totalorder %s78_s18, %s994_s12  ;;  %p1000_p9 = scmp.lt.s32.totalorder %s994_s12, %s994_s12 }
  0x4e   :  { %p1001_p10 = por %p1000_p9, %p999_p8 }
  0x50   :  { %p1002_p11 = pnand %p1001_p10, %p995_p7 }
  0x52   :  { %1005 = shalt.err (!%p1002_p11)
}
  0x53   :  { %83 = dma.hbm_to_vmem [thread:$0]  %s1217_s7, 2048, %s78_s18, [#allocation9], %s1038_s21, %s1038_s21, %s1039_s22  }
  0x54   :  { %1028 = dma.done.wait [#allocation3], 256  }
  0x55   :  { %1029 = vsyncadd [#allocation3], 4294967040 }
  0x56   :  { %1030 = dma.done.wait [#allocation6], 4096  }
  0x57   :  { %1031 = vsyncadd [#allocation6], 4294963200 }
  0x58   :  { %1032 = dma.done.wait [#allocation9], 4096  }
  0x59   :  { %1033 = vsyncadd [#allocation9], 4294963200  ;;  %v103_v0 = vld [vmem:[#allocation5] sm:$0xff]  ;;  %v104_v1 = vld [vmem:[#allocation5 + $0x8] sm:$0xff] }
  0x5a   :  { %v105_v2 = vld [vmem:[#allocation5 + $0x10] sm:$0xff]  ;;  %v752_v3 = vpack.c.bf16 %v104_v1, %v103_v0  ;;  %v106_v4 = vld [vmem:[#allocation5 + $0x18] sm:$0xff]  ;;  %v107_v6 = vld [vmem:[#allocation5 + $0x20] sm:$0xff] }
  0x5b   :  { %v756_v5 = vpack.c.bf16 %v106_v4, %v105_v2  ;;  %v108_v7 = vld [vmem:[#allocation5 + $0x28] sm:$0xff]  ;;  %v109_v9 = vld [vmem:[#allocation5 + $0x30] sm:$0xff]  ;;  %v110_v10 = vld [vmem:[#allocation5 + $0x38] sm:$0xff] }
  0x5c   :  { %753 = vmatprep.subr.bf16.mxu0 %v752_v3  ;;  %v760_v8 = vpack.c.bf16 %v108_v7, %v107_v6  ;;  %v101_v11 = vld [vmem:[#allocation2] sm:$0xff]  ;;  %v203_v12 = vld [vmem:[#allocation7] sm:$0xff]  ;;  %v204_v13 = vld [vmem:[#allocation7 + $0x8] sm:$0xff]  ;;  %v764_v20 = vpack.c.bf16 %v110_v10, %v109_v9 }
  0x5d   :  { %755 = vmatpush3.bf16.msra.mxu0 %v752_v3  ;;  %644 = vmatprep.mubr.f32.mxu0 %v101_v11  ;;  %v205_v14 = vld [vmem:[#allocation7 + $0x10] sm:$0xff]  ;;  %v784_v15 = vpack.c.bf16 %v204_v13, %v203_v12  ;;  %v206_v16 = vld [vmem:[#allocation7 + $0x18] sm:$0xff]  ;;  %v207_v18 = vld [vmem:[#allocation7 + $0x20] sm:$0xff] }
  0x5e   :  { %757 = vmatprep.subr.bf16.mxu0 %v756_v5  ;;  %v788_v17 = vpack.c.bf16 %v206_v16, %v205_v14  ;;  %v208_v19 = vld [vmem:[#allocation7 + $0x28] sm:$0xff]  ;;  %v111_v21 = vld [vmem:[#allocation5 + $0x40] sm:$0xff]  ;;  %v209_v24 = vld [vmem:[#allocation7 + $0x30] sm:$0xff] }
  0x5f   :  { %785 = vmatprep.subr.bf16.mxu1 %v784_v15  ;;  %v112_v22 = vld [vmem:[#allocation5 + $0x48] sm:$0xff]  ;;  %v792_v23 = vpack.c.bf16 %v208_v19, %v207_v18  ;;  %v210_v25 = vld [vmem:[#allocation7 + $0x38] sm:$0xff]  ;;  %v113_v27 = vld [vmem:[#allocation5 + $0x50] sm:$0xff] }
  0x60   :  { %787 = vmatpush3.bf16.msra.mxu1 %v784_v15  ;;  %v768_v26 = vpack.c.bf16 %v112_v22, %v111_v21  ;;  %v114_v28 = vld [vmem:[#allocation5 + $0x58] sm:$0xff]  ;;  %v796_v29 = vpack.c.bf16 %v210_v25, %v209_v24  ;;  %v211_v30 = vld [vmem:[#allocation7 + $0x40] sm:$0xff]  ;;  %v212_v31 = vld [vmem:[#allocation7 + $0x48] sm:$0xff] }
  0x61   :  { %759 = vmatpush3.bf16.msra.mxu0 %v756_v5  ;;  %789 = vmatprep.subr.bf16.mxu1 %v788_v17  ;;  %v772_v32 = vpack.c.bf16 %v114_v28, %v113_v27  ;;  %v115_v33 = vld [vmem:[#allocation5 + $0x60] sm:$0xff]  ;;  %v116_v34 = vld [vmem:[#allocation5 + $0x68] sm:$0xff]  ;;  %v800_v35 = vpack.c.bf16 %v212_v31, %v211_v30  ;;  %v213_v36 = vld [vmem:[#allocation7 + $0x50] sm:$0xff] }
  0x62   :  { %761 = vmatprep.subr.bf16.mxu0 %v760_v8  ;;  %v214_v37 = vld [vmem:[#allocation7 + $0x58] sm:$0xff]  ;;  %v776_v38 = vpack.c.bf16 %v116_v34, %v115_v33  ;;  %v117_v39 = vld [vmem:[#allocation5 + $0x70] sm:$0xff]  ;;  %v215_v42 = vld [vmem:[#allocation7 + $0x60] sm:$0xff] }
  0x63   :  { %v118_v40 = vld [vmem:[#allocation5 + $0x78] sm:$0xff]  ;;  %v804_v41 = vpack.c.bf16 %v214_v37, %v213_v36  ;;  %v216_v43 = vld [vmem:[#allocation7 + $0x68] sm:$0xff]  ;;  %v217_v47 = vld [vmem:[#allocation7 + $0x70] sm:$0xff] }
  0x64   :  { %791 = vmatpush3.bf16.msra.mxu1 %v788_v17  ;;  %v780_v44 = vpack.c.bf16 %v118_v40, %v117_v39  ;;  %v808_v45 = vpack.c.bf16 %v216_v43, %v215_v42  ;;  %v102_v46 = vld [vmem:[#allocation2 + $0x8] sm:$0xff]  ;;  %v303_v50 = vld [vmem:[#allocation8] sm:$0xff]  ;;  %v304_v51 = vld [vmem:[#allocation8 + $0x8] sm:$0xff] }
  0x65   :  { %763 = vmatpush3.bf16.msra.mxu0 %v760_v8  ;;  %793 = vmatprep.subr.bf16.mxu1 %v792_v23  ;;  %v218_v48 = vld [vmem:[#allocation7 + $0x78] sm:$0xff]  ;;  %v305_v52 = vld [vmem:[#allocation8 + $0x10] sm:$0xff]  ;;  %v816_v53 = vpack.c.bf16 %v304_v51, %v303_v50  ;;  %v307_v56 = vld [vmem:[#allocation8 + $0x20] sm:$0xff] }
  0x66   :  { %765 = vmatprep.subr.bf16.mxu0 %v764_v20  ;;  %v812_v49 = vpack.c.bf16 %v218_v48, %v217_v47  ;;  %v306_v54 = vld [vmem:[#allocation8 + $0x18] sm:$0xff]  ;;  %v308_v57 = vld [vmem:[#allocation8 + $0x28] sm:$0xff]  ;;  %v309_v59 = vld [vmem:[#allocation8 + $0x30] sm:$0xff] }
  0x67   :  { %v820_v55 = vpack.c.bf16 %v306_v54, %v305_v52  ;;  %v824_v58 = vpack.c.bf16 %v308_v57, %v307_v56  ;;  %v310_v60 = vld [vmem:[#allocation8 + $0x38] sm:$0xff]  ;;  %v311_v62 = vld [vmem:[#allocation8 + $0x40] sm:$0xff]  ;;  %v312_v63 = vld [vmem:[#allocation8 + $0x48] sm:$0xff] }
  0x68   :  { %795 = vmatpush3.bf16.msra.mxu1 %v792_v23  ;;  %v828_v61 = vpack.c.bf16 %v310_v60, %v309_v59  ;;  %v832_v0 = vpack.c.bf16 %v312_v63, %v311_v62  ;;  %v313_v1 = vld [vmem:[#allocation8 + $0x50] sm:$0xff]  ;;  %v314_v2 = vld [vmem:[#allocation8 + $0x58] sm:$0xff]  ;;  %v315_v4 = vld [vmem:[#allocation8 + $0x60] sm:$0xff] }
  0x69   :  { %767 = vmatpush3.bf16.msra.mxu0 %v764_v20  ;;  %797 = vmatprep.subr.bf16.mxu1 %v796_v29  ;;  %v836_v3 = vpack.c.bf16 %v314_v2, %v313_v1  ;;  %v316_v5 = vld [vmem:[#allocation8 + $0x68] sm:$0xff]  ;;  %v534_v7 = vld [vmem:[%s1212_s2] ss:$0 sm:$0xff]  ;;  %v318_v15 = vld [vmem:[#allocation8 + $0x78] sm:$0xff] }
  0x6a   :  { %769 = vmatprep.subr.bf16.mxu0 %v768_v26  ;;  %v840_v6 = vpack.c.bf16 %v316_v5, %v315_v4  ;;  %v317_v14 = vld [vmem:[#allocation8 + $0x70] sm:$0xff]  ;;  %v403_v17 = vld [vmem:[#allocation10] sm:$0xff]  ;;  %v404_v18 = vld [vmem:[#allocation10 + $0x8] sm:$0xff] }
  0x6b   :  { %v844_v16 = vpack.c.bf16 %v318_v15, %v317_v14  ;;  %v405_v19 = vld [vmem:[#allocation10 + $0x10] sm:$0xff]  ;;  %v848_v20 = vpack.c.bf16 %v404_v18, %v403_v17  ;;  %v406_v21 = vld [vmem:[#allocation10 + $0x18] sm:$0xff]  ;;  %v407_v23 = vld [vmem:[#allocation10 + $0x20] sm:$0xff] }
  0x6c   :  { %799 = vmatpush3.bf16.msra.mxu1 %v796_v29  ;;  %v852_v22 = vpack.c.bf16 %v406_v21, %v405_v19  ;;  %v408_v24 = vld [vmem:[#allocation10 + $0x28] sm:$0xff]  ;;  %v410_v27 = vld [vmem:[#allocation10 + $0x38] sm:$0xff]  ;;  %v411_v29 = vld [vmem:[#allocation10 + $0x40] sm:$0xff] }
  0x6d   :  { %771 = vmatpush3.bf16.msra.mxu0 %v768_v26  ;;  %801 = vmatprep.subr.bf16.mxu1 %v800_v35  ;;  %v856_v25 = vpack.c.bf16 %v408_v24, %v407_v23  ;;  %v409_v26 = vld [vmem:[#allocation10 + $0x30] sm:$0xff]  ;;  %v412_v30 = vld [vmem:[#allocation10 + $0x48] sm:$0xff]  ;;  %v414_v33 = vld [vmem:[#allocation10 + $0x58] sm:$0xff] }
  0x6e   :  { %773 = vmatprep.subr.bf16.mxu0 %v772_v32  ;;  %v860_v28 = vpack.c.bf16 %v410_v27, %v409_v26  ;;  %v864_v31 = vpack.c.bf16 %v412_v30, %v411_v29  ;;  %v416_v36 = vld [vmem:[#allocation10 + $0x68] sm:$0xff]  ;;  %v536_v48 = vld [vmem:[%s1216_s6] ss:$0 sm:$0xff]  ;;  %s1043_s6 = smov [#allocation11]  }
  0x6f   :  { %s520_s13 = sshll.u32 %s1043_s6, 4  ;;  %s521_s13 = int_to_ptr.vmem [resolvable:$true] %s520_s13 }
  0x70   :  { %803 = vmatpush3.bf16.msra.mxu1 %v800_v35  ;;  %v415_v35 = vld [vmem:[#allocation10 + $0x60] sm:$0xff]  ;;  %p1011_p13 = scmp.lt.s32.totalorder %s521_s13, %s521_s13 }
  0x71   :  { %775 = vmatpush3.bf16.msra.mxu0 %v772_v32  ;;  %805 = vmatprep.subr.bf16.mxu1 %v804_v41  ;;  %v413_v32 = vld [vmem:[#allocation10 + $0x50] sm:$0xff]  ;;  %v872_v37 = vpack.c.bf16 %v416_v36, %v415_v35 }
  0x72   :  { %777 = vmatprep.subr.bf16.mxu0 %v776_v38  ;;  %v868_v34 = vpack.c.bf16 %v414_v33, %v413_v32 }
  0x74   :  { %807 = vmatpush3.bf16.msra.mxu1 %v804_v41 }
  0x75   :  { %779 = vmatpush3.bf16.msra.mxu0 %v776_v38  ;;  %809 = vmatprep.subr.bf16.mxu1 %v808_v45  ;;  %v535_v38 = vld [vmem:[%s1214_s4] ss:$0 sm:$0xff] }
  0x76   :  { %781 = vmatprep.subr.bf16.mxu0 %v780_v44 }
  0x78   :  { %811 = vmatpush3.bf16.msra.mxu1 %v808_v45  ;;  %v417_v45 = vld [vmem:[#allocation10 + $0x70] sm:$0xff] }
  0x79   :  { %783 = vmatpush3.bf16.msra.mxu0 %v780_v44  ;;  %813 = vmatprep.subr.bf16.mxu1 %v812_v49 }
  0x7a   :  { %817 = vmatprep.subr.bf16.mxu0 %v816_v53 }
  0x7c   :  { %645 = vmatmul.mubr.f32.vlgmr.msra.gmra.mrb[0].mxu0 %v102_v46  ;;  %815 = vmatpush3.bf16.msra.mxu1 %v812_v49  ;;  %v418_v46 = vld [vmem:[#allocation10 + $0x78] sm:$0xff] }
  0x7d   :  { %819 = vmatpush3.bf16.msra.mxu0 %v816_v53  ;;  %849 = vmatprep.subr.bf16.mxu1 %v848_v20  ;;  %v876_v47 = vpack.c.bf16 %v418_v46, %v417_v45 }
  0x7e   :  { %821 = vmatprep.subr.bf16.mxu0 %v820_v55 }
  0x81   :  { %823 = vmatpush3.bf16.msra.mxu0 %v820_v55  ;;  %v537_v55 = vld [vmem:[%s1218_s8] ss:$0 sm:$0xff]  ;;  %s1006_s8 = scalar_lea.vmem %s521_s13, 256 }
  0x82   :  { %825 = vmatprep.subr.bf16.mxu0 %v824_v58  ;;  %p1007_p12 = scmp.ne.s32.totalorder %s521_s13, %s1006_s8  ;;  %p1012_p0 = scmp.lt.s32.totalorder %s1006_s8, %s1006_s8 }
  0x84   :  { %p1013_p1 = por %p1012_p0, %p1011_p13 }
  0x85   :  { %827 = vmatpush3.bf16.msra.mxu0 %v824_v58 }
  0x86   :  { %829 = vmatprep.subr.bf16.mxu0 %v828_v61  ;;  %p1014_p2 = pnand %p1013_p1, %p1007_p12 }
  0x89   :  { %831 = vmatpush3.bf16.msra.mxu0 %v828_v61 }
  0x8a   :  { %833 = vmatprep.subr.bf16.mxu0 %v832_v0 }
  0x8d   :  { %835 = vmatpush3.bf16.msra.mxu0 %v832_v0 }
  0x8e   :  { %837 = vmatprep.subr.bf16.mxu0 %v836_v3 }
  0x91   :  { %839 = vmatpush3.bf16.msra.mxu0 %v836_v3 }
  0x92   :  { %841 = vmatprep.subr.bf16.mxu0 %v840_v6 }
  0x95   :  { %843 = vmatpush3.bf16.msra.mxu0 %v840_v6 }
  0x96   :  { %845 = vmatprep.subr.bf16.mxu0 %v844_v16 }
  0x99   :  { %847 = vmatpush3.bf16.msra.mxu0 %v844_v16 }
 0x14f   :  { %v646_v8 = vpop.f32.mrb[0].mxu0 }
 0x150   :  { %v198_v9 = vadd.f32 %v646_v8, %v534_v7  ;;  %v192_v10 = vpop.f32.mrb[1].mxu0 }
 0x151   :  { %v193_v11 = vadd.f32 %v534_v7, %v192_v10 }
 0x152   :  { %v202_v13 = vmax.f32 %v198_v9, 0.0 }
 0x153   :  { %v201_v12 = vmax.f32 %v193_v11, 0.0 }
 0x155   :  { %679 = vmatprep.mubr.f32.mxu1 %v201_v12 }
 0x156   :  { %680 = vmatmul.mubr.f32.vlgmr.msra.gmra.mrb[0].mxu1 %v202_v13 }
 0x157   :  { %851 = vmatpush3.bf16.msra.mxu1 %v848_v20 }
 0x158   :  { %853 = vmatprep.subr.bf16.mxu1 %v852_v22 }
 0x15b   :  { %855 = vmatpush3.bf16.msra.mxu1 %v852_v22 }
 0x15c   :  { %857 = vmatprep.subr.bf16.mxu1 %v856_v25 }
 0x15f   :  { %859 = vmatpush3.bf16.msra.mxu1 %v856_v25 }
 0x160   :  { %861 = vmatprep.subr.bf16.mxu1 %v860_v28 }
 0x163   :  { %863 = vmatpush3.bf16.msra.mxu1 %v860_v28 }
 0x164   :  { %865 = vmatprep.subr.bf16.mxu1 %v864_v31 }
 0x167   :  { %867 = vmatpush3.bf16.msra.mxu1 %v864_v31 }
 0x168   :  { %869 = vmatprep.subr.bf16.mxu1 %v868_v34 }
 0x16b   :  { %871 = vmatpush3.bf16.msra.mxu1 %v868_v34 }
 0x16c   :  { %873 = vmatprep.subr.bf16.mxu1 %v872_v37 }
 0x16f   :  { %875 = vmatpush3.bf16.msra.mxu1 %v872_v37 }
 0x170   :  { %877 = vmatprep.subr.bf16.mxu1 %v876_v47 }
 0x173   :  { %879 = vmatpush3.bf16.msra.mxu1 %v876_v47 }
 0x229   :  { %v681_v39 = vpop.f32.mrb[0].mxu1 }
 0x22a   :  { %v298_v40 = vadd.f32 %v681_v39, %v535_v38  ;;  %v292_v41 = vpop.f32.mrb[1].mxu1 }
 0x22b   :  { %v293_v42 = vadd.f32 %v535_v38, %v292_v41 }
 0x22c   :  { %v302_v44 = vmax.f32 %v298_v40, 0.0 }
 0x22d   :  { %v301_v43 = vmax.f32 %v293_v42, 0.0 }
 0x22f   :  { %714 = vmatprep.mubr.f32.mxu0 %v301_v43 }
 0x230   :  { %715 = vmatmul.mubr.f32.vlgmr.msra.gmra.mrb[2].mxu0 %v302_v44 }
 0x303   :  { %v716_v49 = vpop.f32.mrb[2].mxu0 }
 0x304   :  { %v398_v50 = vadd.f32 %v716_v49, %v536_v48  ;;  %v392_v51 = vpop.f32.mrb[3].mxu0 }
 0x305   :  { %v393_v52 = vadd.f32 %v536_v48, %v392_v51 }
 0x306   :  { %v402_v54 = vmax.f32 %v398_v50, 0.0 }
 0x307   :  { %v401_v53 = vmax.f32 %v393_v52, 0.0 }
 0x309   :  { %749 = vmatprep.mubr.f32.mxu1 %v401_v53 }
 0x30a   :  { %750 = vmatmul.mubr.f32.vlgmr.msra.gmra.mrb[2].mxu1 %v402_v54 }
 0x3dd   :  { %v751_v56 = vpop.f32.mrb[2].mxu1 }
 0x3de   :  { %v498_v57 = vadd.f32 %v751_v56, %v537_v55  ;;  %v492_v58 = vpop.f32.mrb[3].mxu1 }
 0x3df   :  { %v493_v59 = vadd.f32 %v537_v55, %v492_v58 }
 0x3e0   :  { %v539_v60 = vmul.f32 -1.442695, %v498_v57 }
 0x3e1   :  { %v538_v61 = vmul.f32 -1.442695, %v493_v59 }
 0x3e2   :  { %888 = vpow2.f32 %v539_v60 }
 0x3e3   :  { %890 = vpow2.f32 %v538_v61 }
 0x3ec   :  { %v889_v62 = vpop.eup %888 }
 0x3ed   :  { %v891_v63 = vpop.eup %890  ;;  %v508_v0 = vadd.f32 1.0, %v889_v62 }
 0x3ee   :  { %v507_v1 = vadd.f32 1.0, %v891_v63 }
 0x3ef   :  { %892 = vrcp.f32 %v508_v0 }
 0x3f0   :  { %894 = vrcp.f32 %v507_v1 }
 0x3f9   :  { %v893_v2 = vpop.eup %892 }
 0x3fa   :  { %v895_v3 = vpop.eup %894  ;;  %514 = vst [vmem:[#allocation11 + $0x8] sm:$0xff] %v893_v2 }
 0x3fb   :  { %513 = vst [vmem:[#allocation11] sm:$0xff] %v895_v3 }
 0x3fc   :  { %1017 = shalt.err (!%p1014_p2)
}
 0x3fd   :  { %s1018_s14 = scalar_lea.hbm %s1219_s9, 256 }
 0x3fe   :  { %p1019_p3 = scmp.ne.s32.totalorder %s1219_s9, %s1018_s14  ;;  %p1022_p4 = scmp.lt.u32.totalorder %s1018_s14, %s1219_s9 }
 0x400   :  { %p1024_p5 = pnand %p1022_p4, %p1019_p3 }
 0x402   :  { %1027 = shalt.err (!%p1024_p5)
}
 0x403   :  { %526 = dma.vmem_to_hbm [thread:$0]  %s521_s13, 256, %s1219_s9, [#allocation4], %s1038_s21, %s1038_s21, %s1039_s22  }
 0x404   :  { %1034 = dma.done.wait [#allocation4], 256  }
 0x405   :  { %1035 = vsyncadd [#allocation4], 4294967040 }
 0x406   :  { %530 = vsyncpa [#allocation3], 1 }
 0x407   :  { %531 = vsyncpa [#allocation6], 1 }
 0x408   :  { %532 = vsyncpa [#allocation9], 1 }
 0x409   :  { %533 = vsyncpa [#allocation4], 1 }

</bundles_post_ra>
